<compile_context>
chip_gen: v5e
topology: v5e:2x2
jax: 0.10.0
libtpu: 0.0.40
codegen_flags: <defaults>
</compile_context>

<pallas_src>
import math

import jax
import jax.numpy as jnp
from jax.experimental import pallas as pl
from jax.experimental.pallas import tpu as pltpu

BN_EPS = 1e-5


# ----------------------------- kernel -----------------------------

def explainer_kernel(row_ref, col_ref, ego_ref,
                     wr_ref, wc_ref, we_ref, b0_ref,
                     w1_ref, b1_ref, out_ref):
    """One batch tile:
       h   = relu(row@Wr + col@Wc + ego@We + b0)   (input linears composed into layer 0, BN folded)
       out = h @ W1_blockdiag + b1
    """
    f32 = jnp.float32
    h = (jnp.dot(row_ref[...], wr_ref[...], preferred_element_type=f32)
         + jnp.dot(col_ref[...], wc_ref[...], preferred_element_type=f32)
         + jnp.dot(ego_ref[...], we_ref[...], preferred_element_type=f32)
         + b0_ref[...])
    h = jnp.maximum(h, 0.0)
    out_ref[...] = (jnp.dot(h, w1_ref[...], preferred_element_type=f32)
                    + b1_ref[...]).astype(out_ref.dtype)


# ----------------------------- wrapper -----------------------------

def _round_up(x, m):
    return ((x + m - 1) // m) * m


def explainer_forward(row_embs, col_embs, center_embs, fused, *, block_b=4096):
    """Forward pass. `fused` comes from fuse_params(). Returns [B, num_head, 2]."""
    B, in_dim = row_embs.shape
    K = fused["num_head"]
    out_dim = fused["out_dim"]

    row = row_embs.astype(jnp.float32)
    col = col_embs.astype(jnp.float32)
    ego = center_embs.astype(jnp.float32)

    kh = fused["wr"].shape[1]        # K * hid
    ko = fused["w1"].shape[1]        # K * out_dim

    # Batch tile: sublane-aligned, capped so a large batch yields >= 2 grid steps (v7x 2-TC).
    bb = min(block_b, _round_up(max(1, -(-B // 2)), 8))
    grid = (pl.cdiv(B, bb),)
    pinned = lambda i: (0, 0)        # weights/biases stay VMEM-resident across the grid

    out_flat = pl.pallas_call(
        explainer_kernel,
        out_shape=jax.ShapeDtypeStruct((B, ko), jnp.float32),
        grid=grid,
        in_specs=[
            pl.BlockSpec((bb, in_dim), lambda i: (i, 0)),   # row tile
            pl.BlockSpec((bb, in_dim), lambda i: (i, 0)),   # col tile
            pl.BlockSpec((bb, in_dim), lambda i: (i, 0)),   # ego tile
            pl.BlockSpec((in_dim, kh), pinned),             # Wr = wr @ (w0*s)
            pl.BlockSpec((in_dim, kh), pinned),             # Wc = wc @ (w0*s)
            pl.BlockSpec((in_dim, kh), pinned),             # We = we @ (w0*s)
            pl.BlockSpec((1, kh), pinned),                  # fused bias (input biases + b0, BN folded)
            pl.BlockSpec((kh, ko), pinned),                 # layer-1 block-diag weight
            pl.BlockSpec((1, ko), pinned),                  # layer-1 bias
        ],
        out_specs=pl.BlockSpec((bb, ko), lambda i: (i, 0)),
        compiler_params=pltpu.CompilerParams(
            dimension_semantics=("parallel",)),
    )(row, col, ego,
      fused["wr"], fused["wc"], fused["we"], fused["b0"],
      fused["w1"], fused["b1"])

    return out_flat.reshape(B, K, out_dim)


# ---------------- parameter init (deterministic, synthetic) ----------------

def xavier_uniform(key, shape, fan_in, fan_out):
    a = math.sqrt(6.0 / float(fan_in + fan_out))
    return jax.random.uniform(key, shape, jnp.float32, -a, a)


def init_params(key, in_dim, hid_dim, num_head):
    ks = jax.random.split(key, 8)
    # Linear weights stored as [in, out] (pre-transposed vs PyTorch's [out, in]).
    wr = xavier_uniform(ks[0], (in_dim, hid_dim), in_dim, hid_dim)
    wc = xavier_uniform(ks[1], (in_dim, hid_dim), in_dim, hid_dim)
    we = xavier_uniform(ks[2], (in_dim, hid_dim), in_dim, hid_dim)
    br = jnp.zeros((1, hid_dim), jnp.float32)
    bc = jnp.zeros((1, hid_dim), jnp.float32)
    be = jnp.zeros((1, hid_dim), jnp.float32)
    # ParallelMLP: layer sizes [hid, hid, 2]; weight[i] is [K, in_i, out_i].
    w0 = xavier_uniform(ks[3], (num_head, hid_dim, hid_dim), hid_dim, hid_dim)
    b0 = jnp.zeros((num_head, hid_dim), jnp.float32)
    w1 = xavier_uniform(ks[4], (num_head, hid_dim, 2), hid_dim, 2)
    b1 = jnp.zeros((num_head, 2), jnp.float32)
    return dict(wr=wr, br=br, wc=wc, bc=bc, we=we, be=be,
                w0=w0, b0=b0, w1=w1, b1=b1)


def fuse_params(p):
    """One-time parameter transform:
       1) flatten ParallelMLP layer 0 to [hid, K*hid] and fold the eval BatchNorm scale,
       2) compose each input Linear with it: Wx = w_x @ w0f  ([in_dim, K*hid]),
       3) fused bias b0f_total = (br+bc+be) @ w0f + b0*s,
       4) build the block-diagonal layer-1 weight [K*hid, K*out]."""
    f32 = jnp.float32
    s = 1.0 / math.sqrt(1.0 + BN_EPS)  # BatchNorm1d eval with default running stats
    K, hid, _ = p["w0"].shape
    # einsum('bi,kih->bkh') == x @ w0.transpose(1,0,2).reshape(hid, K*hid); col index = k*hid + h
    w0f = (jnp.transpose(p["w0"], (1, 0, 2)).reshape(hid, K * hid) * s).astype(f32)
    b0s = (p["b0"].reshape(1, K * hid) * s).astype(f32)

    wr_big = (p["wr"].astype(f32) @ w0f)                     # [in_dim, K*hid]
    wc_big = (p["wc"].astype(f32) @ w0f)
    we_big = (p["we"].astype(f32) @ w0f)
    bsum = (p["br"] + p["bc"] + p["be"]).reshape(1, hid).astype(f32)
    b_big = bsum @ w0f + b0s                                 # [1, K*hid]

    out_dim = p["w1"].shape[-1]
    w1bd = jnp.zeros((K * hid, K * out_dim), f32)
    for k in range(K):
        w1bd = w1bd.at[k * hid:(k + 1) * hid, k * out_dim:(k + 1) * out_dim].set(p["w1"][k])
    b1f = p["b1"].reshape(1, K * out_dim).astype(f32)

    return dict(wr=wr_big, wc=wc_big, we=we_big, b0=b_big, w1=w1bd, b1=b1f,
                num_head=K, out_dim=out_dim)


# ---------------- plain-JAX reference (for correctness check) ----------------

def reference_forward(row, col, ego, p):
    edge = (row @ p["wr"] + p["br"]
            + col @ p["wc"] + p["bc"]
            + ego @ p["we"] + p["be"])
    h = jnp.einsum('bi,kih->bkh', edge, p["w0"]) + p["b0"][None]
    h = jax.nn.relu(h / math.sqrt(1.0 + BN_EPS))
    out = jnp.einsum('bki,kio->bko', h, p["w1"]) + p["b1"][None]
    return out


if __name__ == "__main__":
    B, in_dim, hid_dim, num_head = 8, 16, 32, 4

    key = jax.random.PRNGKey(0)
    k_row, k_col, k_ego, k_par = jax.random.split(key, 4)

    row_embs = jax.random.normal(k_row, (B, in_dim), jnp.float32)
    col_embs = jax.random.normal(k_col, (B, in_dim), jnp.float32)
    center_embs = jax.random.normal(k_ego, (B, in_dim), jnp.float32)

    params = init_params(k_par, in_dim, hid_dim, num_head)
    fused = fuse_params(params)

    out = explainer_forward(row_embs, col_embs, center_embs, fused)
    out = jax.block_until_ready(out)

    ref = reference_forward(row_embs, col_embs, center_embs, params)
    assert out.shape == (B, num_head, 2), out.shape
    assert jnp.allclose(out, ref, atol=1e-4, rtol=1e-4), "mismatch vs reference"

    print("KERNEL_OK")
</pallas_src>

<mosaic_0001>
module attributes {stable_mosaic.version = 11 : i64} {
  func.func @explainer_kernel(%arg0: i32, %arg1: memref<8x16xf32, #tpu.memory_space<vmem>>, %arg2: memref<8x16xf32, #tpu.memory_space<vmem>>, %arg3: memref<8x16xf32, #tpu.memory_space<vmem>>, %arg4: memref<16x128xf32, #tpu.memory_space<vmem>>, %arg5: memref<16x128xf32, #tpu.memory_space<vmem>>, %arg6: memref<16x128xf32, #tpu.memory_space<vmem>>, %arg7: memref<1x128xf32, #tpu.memory_space<vmem>>, %arg8: memref<128x8xf32, #tpu.memory_space<vmem>>, %arg9: memref<1x8xf32, #tpu.memory_space<vmem>>, %arg10: memref<8x8xf32, #tpu.memory_space<vmem>>) attributes {dimension_semantics = [#tpu.dimension_semantics<parallel>], iteration_bounds = array<i64: 1>, scalar_prefetch = 0 : i64, scratch_operands = 0 : i64, tpu.core_type = #tpu.core_type<tc>, window_params = [{transform_indices = @transform_0, window_bounds = array<i64: 8, 16>}, {transform_indices = @transform_1, window_bounds = array<i64: 8, 16>}, {transform_indices = @transform_2, window_bounds = array<i64: 8, 16>}, {pipeline_mode = #tpu.pipeline_mode<synchronous>, transform_indices = @transform_3, window_bounds = array<i64: 16, 128>}, {pipeline_mode = #tpu.pipeline_mode<synchronous>, transform_indices = @transform_4, window_bounds = array<i64: 16, 128>}, {pipeline_mode = #tpu.pipeline_mode<synchronous>, transform_indices = @transform_5, window_bounds = array<i64: 16, 128>}, {pipeline_mode = #tpu.pipeline_mode<synchronous>, transform_indices = @transform_6, window_bounds = array<i64: 1, 128>}, {pipeline_mode = #tpu.pipeline_mode<synchronous>, transform_indices = @transform_7, window_bounds = array<i64: 128, 8>}, {pipeline_mode = #tpu.pipeline_mode<synchronous>, transform_indices = @transform_8, window_bounds = array<i64: 1, 8>}, {transform_indices = @transform_9, window_bounds = array<i64: 8, 8>}]} {
    %c0 = arith.constant 0 : index
    %c0_0 = arith.constant 0 : index
    %0 = vector.load %arg1[%c0, %c0_0] : memref<8x16xf32, #tpu.memory_space<vmem>>, vector<8x16xf32>
    %c0_1 = arith.constant 0 : index
    %c0_2 = arith.constant 0 : index
    %1 = vector.load %arg4[%c0_1, %c0_2] : memref<16x128xf32, #tpu.memory_space<vmem>>, vector<16x128xf32>
    %cst = arith.constant dense<0.000000e+00> : vector<8x128xf32>
    %2 = tpu.matmul %0, %1, %cst {dimension_numbers = #tpu.dot_dimension_numbers<[1], [0], [0], [1], [0, 0, 1, 1], [], []>} : vector<8x16xf32>, vector<16x128xf32>, vector<8x128xf32> -> vector<8x128xf32>
    %c0_3 = arith.constant 0 : index
    %c0_4 = arith.constant 0 : index
    %3 = vector.load %arg2[%c0_3, %c0_4] : memref<8x16xf32, #tpu.memory_space<vmem>>, vector<8x16xf32>
    %c0_5 = arith.constant 0 : index
    %c0_6 = arith.constant 0 : index
    %4 = vector.load %arg5[%c0_5, %c0_6] : memref<16x128xf32, #tpu.memory_space<vmem>>, vector<16x128xf32>
    %cst_7 = arith.constant dense<0.000000e+00> : vector<8x128xf32>
    %5 = tpu.matmul %3, %4, %cst_7 {dimension_numbers = #tpu.dot_dimension_numbers<[1], [0], [0], [1], [0, 0, 1, 1], [], []>} : vector<8x16xf32>, vector<16x128xf32>, vector<8x128xf32> -> vector<8x128xf32>
    %6 = arith.addf %2, %5 : vector<8x128xf32>
    %c0_8 = arith.constant 0 : index
    %c0_9 = arith.constant 0 : index
    %7 = vector.load %arg3[%c0_8, %c0_9] : memref<8x16xf32, #tpu.memory_space<vmem>>, vector<8x16xf32>
    %c0_10 = arith.constant 0 : index
    %c0_11 = arith.constant 0 : index
    %8 = vector.load %arg6[%c0_10, %c0_11] : memref<16x128xf32, #tpu.memory_space<vmem>>, vector<16x128xf32>
    %cst_12 = arith.constant dense<0.000000e+00> : vector<8x128xf32>
    %9 = tpu.matmul %7, %8, %cst_12 {dimension_numbers = #tpu.dot_dimension_numbers<[1], [0], [0], [1], [0, 0, 1, 1], [], []>} : vector<8x16xf32>, vector<16x128xf32>, vector<8x128xf32> -> vector<8x128xf32>
    %10 = arith.addf %6, %9 : vector<8x128xf32>
    %c0_13 = arith.constant 0 : index
    %c0_14 = arith.constant 0 : index
    %11 = vector.load %arg7[%c0_13, %c0_14] : memref<1x128xf32, #tpu.memory_space<vmem>>, vector<1x128xf32>
    %12 = vector.broadcast %11 : vector<1x128xf32> to vector<8x128xf32>
    %13 = arith.addf %10, %12 : vector<8x128xf32>
    %cst_15 = arith.constant 0.000000e+00 : f32
    %14 = vector.broadcast %cst_15 : f32 to vector<8x128xf32>
    %15 = arith.maximumf %13, %14 : vector<8x128xf32>
    %c0_16 = arith.constant 0 : index
    %c0_17 = arith.constant 0 : index
    %16 = vector.load %arg8[%c0_16, %c0_17] : memref<128x8xf32, #tpu.memory_space<vmem>>, vector<128x8xf32>
    %cst_18 = arith.constant dense<0.000000e+00> : vector<8x8xf32>
    %17 = tpu.matmul %15, %16, %cst_18 {dimension_numbers = #tpu.dot_dimension_numbers<[1], [0], [0], [1], [0, 0, 1, 1], [], []>} : vector<8x128xf32>, vector<128x8xf32>, vector<8x8xf32> -> vector<8x8xf32>
    %c0_19 = arith.constant 0 : index
    %c0_20 = arith.constant 0 : index
    %18 = vector.load %arg9[%c0_19, %c0_20] : memref<1x8xf32, #tpu.memory_space<vmem>>, vector<1x8xf32>
    %19 = vector.broadcast %18 : vector<1x8xf32> to vector<8x8xf32>
    %20 = arith.addf %17, %19 : vector<8x8xf32>
    %c0_21 = arith.constant 0 : index
    %c0_22 = arith.constant 0 : index
    %21 = vector.load %arg10[%c0_21, %c0_22] : memref<8x8xf32, #tpu.memory_space<vmem>>, vector<8x8xf32>
    tpu.vector_store %arg10[%c0_21, %c0_22], %20 {strides = array<i32>} : memref<8x8xf32, #tpu.memory_space<vmem>>, vector<8x8xf32>,
    return
  }
  func.func @transform_0(%arg0: i32) -> (i32, i32) {
    %c0_i32 = arith.constant 0 : i32
    %c0_i32_0 = arith.constant 0 : i32
    return %arg0, %c0_i32 : i32, i32
  }
  func.func @transform_1(%arg0: i32) -> (i32, i32) {
    %c0_i32 = arith.constant 0 : i32
    %c0_i32_0 = arith.constant 0 : i32
    return %arg0, %c0_i32 : i32, i32
  }
  func.func @transform_2(%arg0: i32) -> (i32, i32) {
    %c0_i32 = arith.constant 0 : i32
    %c0_i32_0 = arith.constant 0 : i32
    return %arg0, %c0_i32 : i32, i32
  }
  func.func @transform_3(%arg0: i32) -> (i32, i32) {
    %c0_i32 = arith.constant 0 : i32
    %c0_i32_0 = arith.constant 0 : i32
    %c0_i32_1 = arith.constant 0 : i32
    return %c0_i32, %c0_i32_0 : i32, i32
  }
  func.func @transform_4(%arg0: i32) -> (i32, i32) {
    %c0_i32 = arith.constant 0 : i32
    %c0_i32_0 = arith.constant 0 : i32
    %c0_i32_1 = arith.constant 0 : i32
    return %c0_i32, %c0_i32_0 : i32, i32
  }
  func.func @transform_5(%arg0: i32) -> (i32, i32) {
    %c0_i32 = arith.constant 0 : i32
    %c0_i32_0 = arith.constant 0 : i32
    %c0_i32_1 = arith.constant 0 : i32
    return %c0_i32, %c0_i32_0 : i32, i32
  }
  func.func @transform_6(%arg0: i32) -> (i32, i32) {
    %c0_i32 = arith.constant 0 : i32
    %c0_i32_0 = arith.constant 0 : i32
    %c0_i32_1 = arith.constant 0 : i32
    return %c0_i32, %c0_i32_0 : i32, i32
  }
  func.func @transform_7(%arg0: i32) -> (i32, i32) {
    %c0_i32 = arith.constant 0 : i32
    %c0_i32_0 = arith.constant 0 : i32
    %c0_i32_1 = arith.constant 0 : i32
    return %c0_i32, %c0_i32_0 : i32, i32
  }
  func.func @transform_8(%arg0: i32) -> (i32, i32) {
    %c0_i32 = arith.constant 0 : i32
    %c0_i32_0 = arith.constant 0 : i32
    %c0_i32_1 = arith.constant 0 : i32
    return %c0_i32, %c0_i32_0 : i32, i32
  }
  func.func @transform_9(%arg0: i32) -> (i32, i32) {
    %c0_i32 = arith.constant 0 : i32
    %c0_i32_0 = arith.constant 0 : i32
    return %arg0, %c0_i32 : i32, i32
  }
}

</mosaic_0001>

<bundles_post_ra>
// kernel: tpu_custom_call.1
= control target key start
LH: loop header
LB: loop body
LE: loop exit
PB: predicated region body
PF: predicated region fallthrough
CT: control target
= control target key end

     0   :  { %vm39_vm0 = vcmask 130048   ;;  %s347_s0 = inlined_call_operand.vmem [shape: f32[8,16], index: 0, kind: input, shape index: {}]   ;;  %s348_s1 = inlined_call_operand.vmem [shape: f32[8,16], index: 1, kind: input, shape index: {}]   ;;  %s349_s2 = inlined_call_operand.vmem [shape: f32[8,16], index: 2, kind: input, shape index: {}]   ;;  %s350_s3 = inlined_call_operand.vmem [shape: f32[16,128], index: 3, kind: input, shape index: {}]   ;;  %s351_s4 = inlined_call_operand.vmem [shape: f32[16,128], index: 4, kind: input, shape index: {}]   ;;  %s352_s5 = inlined_call_operand.vmem [shape: f32[16,128], index: 5, kind: input, shape index: {}]   ;;  %s353_s6 = inlined_call_operand.vmem [shape: f32[1,128], index: 6, kind: input, shape index: {}]   ;;  %s354_s7 = inlined_call_operand.vmem [shape: f32[128,8], index: 7, kind: input, shape index: {}]   ;;  %s355_s8 = inlined_call_operand.vmem [shape: f32[1,8], index: 8, kind: input, shape index: {}]   ;;  %s356_s9 = inlined_call_operand.hbm [shape: f32[8,8], index: 9, kind: output, shape index: {}]  }
   0x1   :  { %v88_v0 = vld [vmem:[%s352_s5 + $0x8] sm:$0xff]  ;;  %v87_v1 = vld [vmem:[%s352_s5] sm:$0xff]  ;;  %v134_v9 = vld [vmem:[%s354_s7 + $0x78] sm:$0xff] }
   0x2   :  { %v86_v2 = vld [vmem:[%s349_s2] sm:$0xff]  ;;  %106 = vmatpush.msra.mxu2 %v88_v0  ;;  %v38_v3 = vld [vmem:[%s351_s4 + $0x8] sm:$0xff]  ;;  %v133_v10 = vld [vmem:[%s354_s7 + $0x70] sm:$0xff]  ;;  %139 = vmatpush.msra.mxu3 %v134_v9 }
   0x3   :  { %v35_v4 = vld [vmem:[%s350_s3 + $0x8] sm:$0xff]  ;;  %v37_v5 = vld [vmem:[%s351_s4] sm:$0xff]  ;;  %57 = vmatpush.msra.mxu0 %v38_v3 }
   0x4   :  { %80 = vmatpush.msra.mxu1 %v35_v4  ;;  %v34_v6 = vld [vmem:[%s350_s3] sm:$0xff]  ;;  %107 = vmatpush.msra.mxu2 %v87_v1  ;;  %v132_v11 = vld [vmem:[%s354_s7 + $0x68] sm:$0xff] }
   0x5   :  { %v36_v7 = vld [vmem:[%s348_s1] sm:$0xff]  ;;  %179 = vmatmul.msk.f32.vlgmr.msra.gmra.mxu2 %vm39_vm0, %v86_v2  ;;  %58 = vmatpush.msra.mxu0 %v37_v5 }
   0x6   :  { %v33_v8 = vld [vmem:[%s347_s0] sm:$0xff]  ;;  %81 = vmatpush.msra.mxu1 %v34_v6  ;;  %177 = vmatmul.msk.f32.vlgmr.msra.gmra.mxu0 %vm39_vm0, %v36_v7 }
   0x7   :  { %178 = vmatmul.msk.f32.vlgmr.msra.gmra.mxu1 %vm39_vm0, %v33_v8 }
   0x8   :  { %14 = vsyncpa [#allocation3], 0  ;;  %140 = vmatpush.msra.mxu3 %v133_v10  ;;  %v131_v12 = vld [vmem:[%s354_s7 + $0x60] sm:$0xff]  ;;  %v130_v13 = vld [vmem:[%s354_s7 + $0x58] sm:$0xff]  ;;  %s209_s30 = smov [#allocation2]   ;;  %s168_s12 = sshll.u32 %s356_s9, 4  ;;  %s169_s12 = int_to_ptr.hbm [resolvable:$true] %s168_s12 }
   0x9   :  { %v129_v14 = vld [vmem:[%s354_s7 + $0x50] sm:$0xff]  ;;  %v128_v15 = vld [vmem:[%s354_s7 + $0x48] sm:$0xff]  ;;  %v127_v16 = vld [vmem:[%s354_s7 + $0x40] sm:$0xff]  ;;  %vm159_vm1 = vcmask 64512  }
   0xa   :  { %141 = vmatpush.msra.mxu3 %v132_v11  ;;  %v126_v17 = vld [vmem:[%s354_s7 + $0x38] sm:$0xff]  ;;  %v125_v18 = vld [vmem:[%s354_s7 + $0x30] sm:$0xff]  ;;  %v124_v19 = vld [vmem:[%s354_s7 + $0x28] sm:$0xff] }
   0xb   :  { %v123_v20 = vld [vmem:[%s354_s7 + $0x20] sm:$0xff]  ;;  %v122_v21 = vld [vmem:[%s354_s7 + $0x18] sm:$0xff]  ;;  %v121_v22 = vld [vmem:[%s354_s7 + $0x10] sm:$0xff] }
   0xc   :  { %142 = vmatpush.msra.mxu3 %v131_v12  ;;  %v120_v23 = vld [vmem:[%s354_s7 + $0x8] sm:$0xff]  ;;  %v119_v24 = vld [vmem:[%s354_s7] sm:$0xff]  ;;  %s166_s7 = sshll.u32 %s209_s30, 4  ;;  %s167_s7 = int_to_ptr.vmem [resolvable:$true] %s166_s7 }
   0xd   :  { %v181_v28 = vld [vmem:[%s353_s6] ss:$0 sm:$0xff] }
   0xe   :  { %143 = vmatpush.msra.mxu3 %v130_v13  ;;  %v182_v33 = vld [vmem:[%s355_s8] ss:$0 sm:$0xff] }
  0x10   :  { %144 = vmatpush.msra.mxu3 %v129_v14 }
  0x12   :  { %145 = vmatpush.msra.mxu3 %v128_v15 }
  0x14   :  { %146 = vmatpush.msra.mxu3 %v127_v16 }
  0x16   :  { %147 = vmatpush.msra.mxu3 %v126_v17 }
  0x18   :  { %148 = vmatpush.msra.mxu3 %v125_v18 }
  0x1a   :  { %149 = vmatpush.msra.mxu3 %v124_v19 }
  0x1c   :  { %150 = vmatpush.msra.mxu3 %v123_v20 }
  0x1e   :  { %151 = vmatpush.msra.mxu3 %v122_v21 }
  0x20   :  { %152 = vmatpush.msra.mxu3 %v121_v22 }
  0x22   :  { %153 = vmatpush.msra.mxu3 %v120_v23 }
  0x24   :  { %154 = vmatpush.msra.mxu3 %v119_v24 }
  0x83   :  { %v60_v25 = vpop.f32.mrf.mxu0 }
  0x84   :  { %v83_v26 = vpop.f32.mrf.mxu1 }
  0x85   :  { %v84_v27 = vadd.f32 %v83_v26, %v60_v25 }
  0x88   :  { %v109_v29 = vpop.f32.mrf.mxu2 }
  0x89   :  { %v112_v30 = vadd.f32 %v109_v29, %v84_v27 }
  0x8b   :  { %v117_v31 = vadd.f32 %v181_v28, %v112_v30 }
  0x8d   :  { %v118_v32 = vmax.f32 %v117_v31, 0.0 }
  0x8f   :  { %155 = vmatmul.f32.vlgmr.msra.gmra.mxu3 %v118_v32 }
 0x112   :  { %v156_v34 = vpop.f32.mrf.mxu3 }
 0x113   :  { %v157_v35 = vadd.f32 %v182_v33, %v156_v34 }
 0x115   :  { %160 = vst.msk [vmem:[#allocation2] sm:$0xff] %vm159_vm1, %v157_v35 }
 0x116   :  { %171 = dma.vmem_to_hbm [thread:$0]  %s167_s7, 128, %s169_s12, [#allocation3]  }
 0x117   :  { %207 = dma.done.wait [#allocation3], 128  }
 0x118   :  { %208 = vsyncadd [#allocation3], 4294967168 }
 0x119   :  { %176 = vsyncpa [#allocation3], 1 }

</bundles_post_ra>
